<compile_context>
chip_gen: v7x
topology: tpu7x:2x2x1
jax: 0.10.0
libtpu: 0.0.40
codegen_flags: <defaults>
</compile_context>

<pallas_src>
import functools

import jax
import jax.numpy as jnp
from jax import lax
from jax.experimental import pallas as pl
from jax.experimental.pallas import tpu as pltpu


def _masked_l1_kernel(lens_ref, *refs, t_tile, has_after):
    """Accumulate the masked |before-label| (+ |after-label|) sum per batch.

    lens_ref          : (B,) int32 in SMEM (scalar prefetch) - valid spec rows.
    before/after/lab  : (1, t_tile, M) tiles in native dtype.
    o_ref             : (1, 8, 128) f32 per-batch accumulator (scalar splat).
    """
    if has_after:
        before_ref, after_ref, lab_ref, o_ref = refs
    else:
        before_ref, lab_ref, o_ref = refs
        after_ref = None

    b = pl.program_id(0)
    t = pl.program_id(1)

    @pl.when(t == 0)
    def _init():
        o_ref[...] = jnp.zeros_like(o_ref)

    lab = lab_ref[0].astype(jnp.float32)                        # (t_tile, M)
    absdiff = jnp.abs(before_ref[0].astype(jnp.float32) - lab)
    if has_after:
        absdiff = absdiff + jnp.abs(after_ref[0].astype(jnp.float32) - lab)

    # Reduce over mel bins first, then mask whole time rows (mask broadcasts
    # over mel bins anyway) -> saves one select per element on the VPU.  The
    # where() also discards the undefined tail rows of a partial last tile
    # (cdiv grid), so NaN/Inf garbage can never reach the sum.
    row_sums = jnp.sum(absdiff, axis=1, keepdims=True)          # (t_tile, 1)
    seq_len = lens_ref[b]
    row_idx = lax.broadcasted_iota(jnp.int32, (t_tile, 1), 0) + t * t_tile
    row_sums = jnp.where(row_idx < seq_len, row_sums, 0.0)

    # Per-batch accumulator block is resident across the (arbitrary) t axis.
    o_ref[...] += jnp.sum(row_sums)


def _pick_t_tile(T_spec, M, itemsize, target_bytes):
    """Largest multiple-of-128 row count whose (rows x M) tile <= target_bytes;
    falls back to the full extent when T_spec is small."""
    rows = max(1, target_bytes // max(1, M * itemsize))
    rows = max(128, (rows // 128) * 128)
    if T_spec <= rows:
        return int(T_spec)          # full-extent block: legal for any T_spec
    return int(rows)                # multiple of 128: sublane/packing safe


def fastspeech2_conformer_loss(outputs_after_postnet, outputs_before_postnet,
                               duration_outputs, pitch_outputs, energy_outputs,
                               spectrogram_labels, duration_labels, pitch_labels,
                               energy_labels, duration_mask, spectrogram_mask,
                               use_masking=True, use_weighted_masking=False,
                               t_tile=None):
    if use_weighted_masking:
        # TODO(synk): weighted-masking branch (per-sample weight normalization
        # + ragged masked_select) not implemented as a Pallas kernel.
        raise NotImplementedError("use_weighted_masking=True is not supported")

    before = outputs_before_postnet          # streamed in native dtype (bf16/f32)
    labels = spectrogram_labels
    has_after = outputs_after_postnet is not None

    B, T_spec, M = before.shape
    T_text = duration_outputs.shape[1]

    smask = spectrogram_mask
    if smask.ndim == 3:
        smask = smask[..., 0]
    dmask = duration_mask
    if not use_masking:
        smask = jnp.ones((B, T_spec), jnp.bool_)
        dmask = jnp.ones((B, T_text), jnp.bool_)
    smask_f = smask.astype(jnp.float32)                          # (B, T_spec)
    dmask_f = dmask.astype(jnp.float32)                          # (B, T_text)

    # ---- spectrogram L1 term (the big streaming reduction) -> Pallas --------
    # TODO(synk): the kernel rebuilds the spectrogram mask from per-batch valid
    # lengths (prefix/padding mask, as FastSpeech2 produces); arbitrary
    # non-prefix masks are not reproduced inside the kernel, though the masked
    # count below stays exact.
    spec_lens = jnp.sum(smask_f, axis=1).astype(jnp.int32)       # (B,)
    n_spec = jnp.sum(smask_f) * jnp.float32(M)                   # masked_select broadcasts over mel bins

    if t_tile is None:
        target = 2 << 20
        try:
            # Small-VMEM / high-HBM-BW parts (v7x): larger tiles amortize the
            # ~0.35us per-step overhead; 3 inputs x 2 buffers x 4 MiB still
            # fits the default scoped VMEM.
            if getattr(pltpu.get_tpu_info(), "vmem_capacity_bytes",
                       128 << 20) <= (64 << 20):
                target = 4 << 20
        except Exception:
            pass
        t_tile = _pick_t_tile(T_spec, M, jnp.dtype(before.dtype).itemsize, target)
    t_tile = int(min(t_tile, T_spec))
    n_t = pl.cdiv(T_spec, t_tile)

    kernel = functools.partial(_masked_l1_kernel, t_tile=t_tile,
                               has_after=has_after)

    def spec3():
        return pl.BlockSpec((1, t_tile, M), lambda b, t, lens: (b, t, 0))

    inputs = [before]
    in_specs = [spec3()]
    if has_after:
        inputs.append(outputs_after_postnet)
        in_specs.append(spec3())
    inputs.append(labels)
    in_specs.append(spec3())

    partials = pl.pallas_call(
        kernel,
        out_shape=jax.ShapeDtypeStruct((B, 8, 128), jnp.float32),
        grid_spec=pltpu.PrefetchScalarGridSpec(
            num_scalar_prefetch=1,
            grid=(B, n_t),
            in_specs=in_specs,
            out_specs=pl.BlockSpec((1, 8, 128), lambda b, t, lens: (b, 0, 0)),
        ),
        compiler_params=pltpu.CompilerParams(
            dimension_semantics=("parallel", "arbitrary")),
    )(spec_lens, *inputs)

    l1_loss = jnp.sum(partials[:, 0, 0]) / n_spec

    # ---- token-level losses (KB-scale): plain jnp, XLA fuses these ----------
    n_dur = jnp.sum(dmask_f)
    dur_out = duration_outputs.astype(jnp.float32)
    dur_log_lab = jnp.log(duration_labels.astype(jnp.float32) + 1.0)  # log_domain_offset
    duration_loss = jnp.sum(dmask_f * jnp.square(dur_out - dur_log_lab)) / n_dur

    pm = dmask_f[..., None]
    pit_out = pitch_outputs.astype(jnp.float32).reshape(B, T_text, -1)
    pit_lab = pitch_labels.astype(jnp.float32).reshape(B, T_text, -1)
    en_out = energy_outputs.astype(jnp.float32).reshape(B, T_text, -1)
    en_lab = energy_labels.astype(jnp.float32).reshape(B, T_text, -1)
    pitch_loss = jnp.sum(pm * jnp.square(pit_out - pit_lab)) / n_dur
    energy_loss = jnp.sum(pm * jnp.square(en_out - en_lab)) / n_dur

    return l1_loss + duration_loss + pitch_loss + energy_loss


# ---------------- pure-JAX reference (PyTorch semantics, use_masking=True) ---
def ref_loss(outputs_after_postnet, outputs_before_postnet, duration_outputs,
             pitch_outputs, energy_outputs, spectrogram_labels, duration_labels,
             pitch_labels, energy_labels, duration_mask, spectrogram_mask):
    f32 = jnp.float32
    smask = spectrogram_mask
    if smask.ndim == 2:
        smask = smask[..., None]
    lab = spectrogram_labels.astype(f32)
    m3 = jnp.broadcast_to(smask, lab.shape).astype(f32)
    n_spec = jnp.sum(m3)
    l1 = jnp.sum(jnp.abs(outputs_before_postnet.astype(f32) - lab) * m3) / n_spec
    if outputs_after_postnet is not None:
        l1 = l1 + jnp.sum(jnp.abs(outputs_after_postnet.astype(f32) - lab) * m3) / n_spec
    dm = duration_mask.astype(f32)
    n_dur = jnp.sum(dm)
    dlog = jnp.log(duration_labels.astype(f32) + 1.0)
    duration_loss = jnp.sum(dm * jnp.square(duration_outputs.astype(f32) - dlog)) / n_dur
    pm = dm[..., None]
    pitch_loss = jnp.sum(pm * jnp.square(pitch_outputs.astype(f32)
                                         - pitch_labels.astype(f32))) / n_dur
    energy_loss = jnp.sum(pm * jnp.square(energy_outputs.astype(f32)
                                          - energy_labels.astype(f32))) / n_dur
    return l1 + duration_loss + pitch_loss + energy_loss


if __name__ == "__main__":
    B, T_spec, M, T_text = 2, 1000, 80, 16   # T_spec deliberately not a multiple of the tile

    key = jax.random.PRNGKey(0)
    ks = jax.random.split(key, 10)
    before = jax.random.normal(ks[0], (B, T_spec, M), jnp.float32).astype(jnp.bfloat16)
    after = (before.astype(jnp.float32)
             + 0.1 * jax.random.normal(ks[1], (B, T_spec, M), jnp.float32)
             ).astype(jnp.bfloat16)
    spec_lab = jax.random.normal(ks[2], (B, T_spec, M), jnp.float32).astype(jnp.bfloat16)
    dur_out = jax.random.normal(ks[3], (B, T_text), jnp.float32)
    dur_lab = jax.random.randint(ks[4], (B, T_text), 0, 10).astype(jnp.int32)
    pitch_out = jax.random.normal(ks[5], (B, T_text, 1), jnp.float32)
    pitch_lab = jax.random.normal(ks[6], (B, T_text, 1), jnp.float32)
    energy_out = jax.random.normal(ks[7], (B, T_text, 1), jnp.float32)
    energy_lab = jax.random.normal(ks[8], (B, T_text, 1), jnp.float32)

    # prefix-valid (padding) masks, batch element 1 shorter
    spec_lens = jnp.array([T_spec, T_spec - 237], jnp.int32)
    text_lens = jnp.array([T_text, T_text - 5], jnp.int32)
    spec_mask = (jnp.arange(T_spec)[None, :] < spec_lens[:, None])[..., None]  # (B, T_spec, 1)
    dur_mask = jnp.arange(T_text)[None, :] < text_lens[:, None]                # (B, T_text)

    def check(after_arg, tile):
        got = fastspeech2_conformer_loss(
            after_arg, before, dur_out, pitch_out, energy_out,
            spec_lab, dur_lab, pitch_lab, energy_lab, dur_mask, spec_mask,
            t_tile=tile)
        got = jax.block_until_ready(got)
        want = ref_loss(after_arg, before, dur_out, pitch_out, energy_out,
                        spec_lab, dur_lab, pitch_lab, energy_lab, dur_mask, spec_mask)
        err = abs(float(got) - float(want))
        tol = 1e-3 * max(1.0, abs(float(want)))
        assert err < tol, f"abs error {err} (kernel={float(got)}, ref={float(want)})"

    check(after, 256)    # multi-tile grid + partial (masked) tail tile
    check(after, None)   # default tile size (full extent here)
    check(None, 256)     # no postnet output -> operand dropped from the kernel
    print("KERNEL_OK")
</pallas_src>

<mosaic_0001>
module attributes {stable_mosaic.version = 11 : i64} {
  func.func @_masked_l1_kernel(%arg0: i32, %arg1: i32, %arg2: memref<2xi32, #tpu.memory_space<smem>>, %arg3: memref<1x256x80xbf16, #tpu.memory_space<vmem>>, %arg4: memref<1x256x80xbf16, #tpu.memory_space<vmem>>, %arg5: memref<1x256x80xbf16, #tpu.memory_space<vmem>>, %arg6: memref<1x8x128xf32, #tpu.memory_space<vmem>>) attributes {dimension_semantics = [#tpu.dimension_semantics<parallel>, #tpu.dimension_semantics<arbitrary>], iteration_bounds = array<i64: 2, 4>, scalar_prefetch = 1 : i64, scratch_operands = 0 : i64, tpu.core_type = #tpu.core_type<tc>, window_params = [{transform_indices = @transform_0, window_bounds = array<i64: 1, 256, 80>}, {transform_indices = @transform_1, window_bounds = array<i64: 1, 256, 80>}, {transform_indices = @transform_2, window_bounds = array<i64: 1, 256, 80>}, {transform_indices = @transform_3, window_bounds = array<i64: 1, 8, 128>}]} {
    %c0_i32 = arith.constant 0 : i32
    %0 = arith.cmpi eq, %arg1, %c0_i32 : i32
    %1 = arith.extui %0 : i1 to i32
    %c0_i32_0 = arith.constant 0 : i32
    %2 = arith.cmpi ne, %1, %c0_i32_0 : i32
    scf.if %2 {
      %cst_17 = arith.constant 0.000000e+00 : f32
      %37 = vector.broadcast %cst_17 : f32 to vector<1x8x128xf32>
      %c0_18 = arith.constant 0 : index
      %c0_19 = arith.constant 0 : index
      %c0_20 = arith.constant 0 : index
      %38 = vector.load %arg6[%c0_18, %c0_19, %c0_20] : memref<1x8x128xf32, #tpu.memory_space<vmem>>, vector<1x8x128xf32>
      tpu.vector_store %arg6[%c0_18, %c0_19, %c0_20], %37 {strides = array<i32>} : memref<1x8x128xf32, #tpu.memory_space<vmem>>, vector<1x8x128xf32>,
    } else {
    }
    %c0 = arith.constant 0 : index
    %c0_1 = arith.constant 0 : index
    %c0_2 = arith.constant 0 : index
    %3 = vector.load %arg5[%c0, %c0_1, %c0_2] : memref<1x256x80xbf16, #tpu.memory_space<vmem>>, vector<1x256x80xbf16>
    %4 = vector.shape_cast %3 : vector<1x256x80xbf16> to vector<256x80xbf16>
    %5 = arith.extf %4 : vector<256x80xbf16> to vector<256x80xf32>
    %c0_3 = arith.constant 0 : index
    %c0_4 = arith.constant 0 : index
    %c0_5 = arith.constant 0 : index
    %6 = vector.load %arg3[%c0_3, %c0_4, %c0_5] : memref<1x256x80xbf16, #tpu.memory_space<vmem>>, vector<1x256x80xbf16>
    %7 = vector.shape_cast %6 : vector<1x256x80xbf16> to vector<256x80xbf16>
    %8 = arith.extf %7 : vector<256x80xbf16> to vector<256x80xf32>
    %9 = arith.subf %8, %5 : vector<256x80xf32>
    %10 = math.absf %9 : vector<256x80xf32>
    %c0_6 = arith.constant 0 : index
    %c0_7 = arith.constant 0 : index
    %c0_8 = arith.constant 0 : index
    %11 = vector.load %arg4[%c0_6, %c0_7, %c0_8] : memref<1x256x80xbf16, #tpu.memory_space<vmem>>, vector<1x256x80xbf16>
    %12 = vector.shape_cast %11 : vector<1x256x80xbf16> to vector<256x80xbf16>
    %13 = arith.extf %12 : vector<256x80xbf16> to vector<256x80xf32>
    %14 = arith.subf %13, %5 : vector<256x80xf32>
    %15 = math.absf %14 : vector<256x80xf32>
    %16 = arith.addf %10, %15 : vector<256x80xf32>
    %cst = arith.constant dense<0.000000e+00> : vector<256xf32>
    %17 = vector.multi_reduction <add>, %16, %cst [1] : vector<256x80xf32> to vector<256xf32>
    %18 = vector.shape_cast %17 : vector<256xf32> to vector<256x1xf32>
    %19 = arith.index_cast %arg0 : i32 to index
    %20 = memref.load %arg2[%19] : memref<2xi32, #tpu.memory_space<smem>>
    %21 = tpu.iota {dimensions = array<i32: 0>} : vector<256x1xi32>
    %c256_i32 = arith.constant 256 : i32
    %22 = arith.muli %arg1, %c256_i32 : i32
    %23 = vector.broadcast %22 : i32 to vector<256x1xi32>
    %24 = arith.addi %21, %23 : vector<256x1xi32>
    %25 = vector.broadcast %20 : i32 to vector<256x1xi32>
    %26 = arith.cmpi slt, %24, %25 : vector<256x1xi32>
    %cst_9 = arith.constant 0.000000e+00 : f32
    %27 = vector.broadcast %cst_9 : f32 to vector<256x1xf32>
    %28 = arith.select %26, %18, %27 : vector<256x1xi1>, vector<256x1xf32>
    %c0_10 = arith.constant 0 : index
    %c0_11 = arith.constant 0 : index
    %c0_12 = arith.constant 0 : index
    %29 = vector.load %arg6[%c0_10, %c0_11, %c0_12] : memref<1x8x128xf32, #tpu.memory_space<vmem>>, vector<1x8x128xf32>
    %30 = vector.shape_cast %28 : vector<256x1xf32> to vector<1x256x1xf32>
    %cst_13 = arith.constant dense<0.000000e+00> : vector<1xf32>
    %31 = vector.multi_reduction <add>, %30, %cst_13 [1, 2] : vector<1x256x1xf32> to vector<1xf32>
    %32 = vector.shape_cast %31 : vector<1xf32> to vector<1x1x1xf32>
    %33 = vector.extract %32[0, 0, 0] : f32 from vector<1x1x1xf32>
    %34 = vector.broadcast %33 : f32 to vector<1x8x128xf32>
    %35 = arith.addf %29, %34 : vector<1x8x128xf32>
    %c0_14 = arith.constant 0 : index
    %c0_15 = arith.constant 0 : index
    %c0_16 = arith.constant 0 : index
    %36 = vector.load %arg6[%c0_14, %c0_15, %c0_16] : memref<1x8x128xf32, #tpu.memory_space<vmem>>, vector<1x8x128xf32>
    tpu.vector_store %arg6[%c0_14, %c0_15, %c0_16], %35 {strides = array<i32>} : memref<1x8x128xf32, #tpu.memory_space<vmem>>, vector<1x8x128xf32>,
    return
  }
  func.func @transform_0(%arg0: i32, %arg1: i32, %arg2: memref<2xi32, #tpu.memory_space<smem>>) -> (i32, i32, i32) {
    %c0_i32 = arith.constant 0 : i32
    %c0_i32_0 = arith.constant 0 : i32
    return %arg0, %arg1, %c0_i32 : i32, i32, i32
  }
  func.func @transform_1(%arg0: i32, %arg1: i32, %arg2: memref<2xi32, #tpu.memory_space<smem>>) -> (i32, i32, i32) {
    %c0_i32 = arith.constant 0 : i32
    %c0_i32_0 = arith.constant 0 : i32
    return %arg0, %arg1, %c0_i32 : i32, i32, i32
  }
  func.func @transform_2(%arg0: i32, %arg1: i32, %arg2: memref<2xi32, #tpu.memory_space<smem>>) -> (i32, i32, i32) {
    %c0_i32 = arith.constant 0 : i32
    %c0_i32_0 = arith.constant 0 : i32
    return %arg0, %arg1, %c0_i32 : i32, i32, i32
  }
  func.func @transform_3(%arg0: i32, %arg1: i32, %arg2: memref<2xi32, #tpu.memory_space<smem>>) -> (i32, i32, i32) {
    %c0_i32 = arith.constant 0 : i32
    %c0_i32_0 = arith.constant 0 : i32
    %c0_i32_1 = arith.constant 0 : i32
    return %arg0, %c0_i32, %c0_i32_0 : i32, i32, i32
  }
}

</mosaic_0001>

<bundles_post_ra>
// kernel: tpu_custom_call.1
= control target key start
LH: loop header
LB: loop body
LE: loop exit
PB: predicated region body
PF: predicated region fallthrough
CT: control target
= control target key end

     0   :  { %s1970_s0 = inlined_call_operand.vmem [shape: s32[2], index: 0, kind: input, shape index: {}]   ;;  %s1971_s1 = inlined_call_operand.vmem [shape: bf16[2,1000,80], index: 1, kind: input, shape index: {}]   ;;  %s1972_s2 = inlined_call_operand.vmem [shape: bf16[2,1000,80], index: 2, kind: input, shape index: {}]   ;;  %s1973_s3 = inlined_call_operand.vmem [shape: bf16[2,1000,80], index: 3, kind: input, shape index: {}]   ;;  %s1974_s4 = inlined_call_operand.hbm [shape: f32[2,8,128], index: 4, kind: output, shape index: {}]  }
   0x1   :  { %s9_s17 = sshll.u32 %s1970_s0, 4  ;;  %s10_s17 = int_to_ptr.vmem [resolvable:$true] %s9_s17 }
   0x2   :  { %s1457_s18 = scalar_lea.vmem %s10_s17, 16  ;;  %p1462_p1 = scmp.lt.s32.totalorder %s10_s17, %s10_s17 }
   0x3   :  { %p1458_p0 = scmp.ne.s32.totalorder %s10_s17, %s1457_s18  ;;  %p1463_p2 = scmp.lt.s32.totalorder %s1457_s18, %s1457_s18 }
   0x5   :  { %p1464_p3 = por %p1463_p2, %p1462_p1 }
   0x7   :  { %p1465_p4 = pnand %p1464_p3, %p1458_p0 }
   0x9   :  { %1468 = shalt.err (!%p1465_p4)  }
   0xa   :  { %s1567_s19 = smov [#allocation3]  }
   0xb   :  { %12 = dma.vmem_to_smem %s10_s17, 16, %s1567_s19, [#allocation2] }
   0xc   :  { %1529 = dma.done.wait [#allocation2], 16 }
   0xd   :  { %1530 = vsyncadd [#allocation2], 4294967280 }
   0xe   :  { %14 = sfence }
   0xf   :  { %15 = vsyncpa [#allocation5], 0 }
  0x10   :  { %17 = vsyncpa [#allocation5 + $0x1], 0  ;;  %s1598_s20 = smov 0   ;;  %s1600_s21 = smov 0  }
  0x11   :  { %s1602_s0 = smov 0   ;;  %s1604_s22 = smov 0  }
  0x12   :  { %s1606_s23 = smov 0   ;;  %s1608_s24 = smov 0  }
  0x13   :  { %s1610_s25 = smov 0   ;;  %s1612_s26 = smov 0  }
  0x14 LB: > { %s1126_s27 = sadd.s32 4294967295, %s1565_s26   ;;  %s1127_s28 = sadd.s32 4294967294, %s1565_s26   ;;  %s1565_s26 = sphi %s1612_s26, %s23_s26   ;;  %s1561_s25 = sphi %s1610_s25, %s1990_s25   ;;  %s1557_s24 = sphi %s1608_s24, %s1989_s24   ;;  %s1553_s23 = sphi %s1606_s23, %s1988_s23   ;;  %s1549_s22 = sphi %s1604_s22, %s1987_s22   ;;  %s1545_s0 = sphi %s1602_s0, %s1986_s0   ;;  %s1541_s21 = sphi %s1600_s21, %s1985_s21   ;;  %s1537_s20 = sphi %s1598_s20, %s1984_s20  }
  0x15   : > { %s32_s29 = sadd.s32 1, %s1557_s24  ;;  %s35_s30 = sadd.s32 1, %s1561_s25 }
  0x16   : > { %p33_p5 = scmp.ge.s32.totalorder %s32_s29, 4  ;;  %p136_p6 = scmp.ne.s32.totalorder %s1545_s0, %s1541_s21 }
  0x17   : > { %p137_p7 = scmp.eq.s32.totalorder %s1126_s27, 7  ;;  %p142_p9 = scmp.ne.s32.totalorder %s1541_s21, %s1537_s20 }
  0x18   : > { %s1992_s29 = smov (%p33_p5, %s32_s29), 0  ;;  %s1994_s30 = smov (!%p33_p5, %s35_s30), %s1561_s25 }
  0x19   : > { %1977 = sst [smem:[#allocation8_spill]] %s1992_s29  ;;  %p1647_p8 = por %p137_p7, %p136_p6 }
  0x1a   : > { %p37_p10 = scmp.ge.s32.totalorder %s1994_s30, 2  ;;  %p143_p11 = scmp.eq.s32.totalorder %s1127_s28, 7 }
  0x1b   : > { %p1130_p12 = scmp.ge.s32.totalorder %s1565_s26, 1  ;;  %p224_p13 = scmp.lt.s32.totalorder %s1565_s26, 9 }
  0x1c   : > { %s1996_s30 = smov (%p37_p10, %s1994_s30), 0  ;;  %p1657_p0 = por %p143_p11, %p142_p9 }
  0x1d   : > { %1979 = sst [smem:[#allocation9_spill]] %s1996_s30  ;;  %p225_p1 = pnand %p1130_p12, %p224_p13 }
  0x1e   : > { %s123_s7 = ssub.s32 %s1561_s25, %s1996_s30  ;;  %s126_s8 = sadd.s32 1, %s1545_s0 }
  0x1f   : > { %p124_p2 = scmp.eq.s32.totalorder %s123_s7, 0  ;;  %228 = sbr.rel (%p225_p1) target bundleno = 491 (0x1eb), region = 32 }
  0x20   : > { %s1976_s10 = sand.u32 (!%p225_p1), 1, %s1541_s21   ;;  %s1132_s11 = sshll.u32 (!%p225_p1), %s1549_s22, 5 }
  0x21   : > { %s1665_s9 = scalar_select %p124_p2, %s1545_s0, %s126_s8  }
  0x22   : > { %s1131_s12 = sshll.u32 (!%p225_p1), %s1976_s10, 3  ;;  %p287_p3 = scmp.lt.s32.totalorder (!%p225_p1), %s1553_s23, 1 }
  0x23   : > { %p289_p4 = scmp.lt.s32.totalorder (!%p225_p1), %s1132_s11, 124  ;;  %s1688_s29 = scalar_lea.vmem (!%p225_p1), [#allocation4], %s1131_s12 }
  0x24   : > { %p1138_p5 = scmp.ne.s32.totalorder (!%p225_p1), %s1549_s22, 0 }
  0x26   : > { %s288_s13 = scalar_select %p287_p3, %s1553_s23, 1 }
  0x27   : > { %s1998_s11 = smov (!%p289_p4, %s1132_s11), 124  ;;  %339 = sbr.rel (%p1138_p5) target bundleno = 46 (0x2e), region = 36 }
  0x28   : > { %s1381_s14 = smul.u32 125, %s288_s13  ;;  %v1568_v0 = vmov (!%p1138_p5), 0.0  }
  0x29   : > { %340 = vst [vmem:[%s1688_s29] sm:$0xff] (!%p1138_p5), %v1568_v0 }
  0x2a   : > { %s292_s15 = sadd.s32 %s1381_s14, %s1998_s11 }
  0x2b   : > { %s1133_s16 = sshll.u32 %s292_s15, 2 }
  0x2c   : > { %s1676_s19 = scalar_lea.vmem %s1971_s1, %s1133_s16  ;;  %s1681_s7 = scalar_lea.vmem %s1972_s2, %s1133_s16 }
  0x2d   : > { %s1686_s10 = scalar_lea.vmem %s1973_s3, %s1133_s16 }
  0x2e PF: > { %v1145_v1 = vld [vmem:[%s1686_s10] sm:$0xff]   ;;  %vm693_vm0 = vcmask 654336   ;;  %v1336_v7 = vld [vmem:[%s1686_s10 + $0x8] sm:$0xff]   ;;  %v1337_v23 = vld [vmem:[%s1686_s10 + $0x10] sm:$0xff]   ;;  %s790_s30 = sld [smem:[#allocation3 + %s1553_s23]]  ;;  %vm924_vm4 = vcmask 7168  }
  0x2f   : > { %v1209_v2 = vld [vmem:[%s1676_s19] sm:$0xff]   ;;  %v1146_v4 = vunpack.c.l.bf16 %v1145_v1  ;;  %v1351_v8 = vld [vmem:[%s1676_s19 + $0x8] sm:$0xff]   ;;  %v1147_v10 = vunpack.c.h.bf16 %v1145_v1  ;;  %v1150_v11 = vunpack.c.l.bf16 %v1336_v7  ;;  %v1151_v18 = vunpack.c.h.bf16 %v1336_v7  ;;  %v1352_v28 = vld [vmem:[%s1676_s19 + $0x10] sm:$0xff]   ;;  %s1014_s11 = sshll.u32 %s1688_s29, 4  ;;  %s1981_s16 = sand.u32 1, %s1541_s21   ;;  %s1916_s11 = int_to_ptr.vmem [resolvable:$true] %s1014_s11 }
  0x30   : > { %v1273_v3 = vld [vmem:[%s1681_s7] sm:$0xff]   ;;  %v1210_v5 = vunpack.c.l.bf16 %v1209_v2  ;;  %v1366_v9 = vld [vmem:[%s1681_s7 + $0x8] sm:$0xff]   ;;  %v1214_v12 = vunpack.c.l.bf16 %v1351_v8  ;;  %v1211_v14 = vunpack.c.h.bf16 %v1209_v2  ;;  %v1215_v22 = vunpack.c.h.bf16 %v1351_v8  ;;  %v1367_v29 = vld [vmem:[%s1681_s7 + $0x10] sm:$0xff]   ;;  %s1001_s17 = scalar_lea.sflag [#allocation5], %s1981_s16  ;;  %s1469_s18 = scalar_lea.vmem %s1916_s11, 128 }
  0x31   : > { %v1274_v6 = vunpack.c.l.bf16 %v1273_v3  ;;  %v1278_v13 = vunpack.c.l.bf16 %v1366_v9  ;;  %v1275_v17 = vunpack.c.h.bf16 %v1273_v3  ;;  %v1279_v27 = vunpack.c.h.bf16 %v1366_v9  ;;  %v1338_v42 = vld [vmem:[%s1686_s10 + $0x18] sm:$0xff]   ;;  %v1339_v61 = vld [vmem:[%s1686_s10 + $0x20] sm:$0xff]   ;;  %p1470_p6 = scmp.ne.s32.totalorder %s1916_s11, %s1469_s18 }
  0x32   : > { %v469_v15 = vsub.f32 %v1210_v5, %v1146_v4  ;;  %v471_v19 = vsub.f32 %v1214_v12, %v1150_v11  ;;  %v470_v21 = vsub.f32 %v1211_v14, %v1147_v10  ;;  %v472_v33 = vsub.f32 %v1215_v22, %v1151_v18  ;;  %v1353_v47 = vld [vmem:[%s1676_s19 + $0x18] sm:$0xff]   ;;  %v1354_v2 = vld [vmem:[%s1676_s19 + $0x20] sm:$0xff]  }
  0x33   : > { %v597_v16 = vsub.f32 %v1274_v6, %v1146_v4  ;;  %v599_v20 = vsub.f32 %v1278_v13, %v1150_v11  ;;  %v598_v26 = vsub.f32 %v1275_v17, %v1147_v10  ;;  %v600_v36 = vsub.f32 %v1279_v27, %v1151_v18  ;;  %v1368_v52 = vld [vmem:[%s1681_s7 + $0x18] sm:$0xff]   ;;  %v1369_v7 = vld [vmem:[%s1681_s7 + $0x20] sm:$0xff]   ;;  %p1471_p7 = pnand %p1470_p6, %p1647_p8 }
  0x34   : > { %v501_v24 = vand.u32 2147483647, %v469_v15  ;;  %v503_v30 = vand.u32 2147483647, %v471_v19  ;;  %v502_v32 = vand.u32 2147483647, %v470_v21  ;;  %v1154_v37 = vunpack.c.l.bf16 %v1337_v23 }
  0x35   : > { %v629_v25 = vand.u32 2147483647, %v597_v16  ;;  %v631_v31 = vand.u32 2147483647, %v599_v20  ;;  %v630_v35 = vand.u32 2147483647, %v598_v26  ;;  %v1218_v40 = vunpack.c.l.bf16 %v1352_v28  ;;  %p1472_p9 = pneg %p1471_p7 }
  0x36   : > { %v504_v39 = vand.u32 2147483647, %v472_v33  ;;  %v1282_v41 = vunpack.c.l.bf16 %v1367_v29  ;;  %v632_v45 = vand.u32 2147483647, %v600_v36  ;;  %v1155_v46 = vunpack.c.h.bf16 %v1337_v23  ;;  %v1340_v20 = vld [vmem:[%s1686_s10 + $0x28] sm:$0xff]  }
  0x37   : > { %v661_v34 = vadd.f32 %v629_v25, %v501_v24  ;;  %v663_v38 = vadd.f32 %v631_v31, %v503_v30  ;;  %v662_v44 = vadd.f32 %v630_v35, %v502_v32  ;;  %v473_v49 = vsub.f32 %v1218_v40, %v1154_v37  ;;  %v1355_v25 = vld [vmem:[%s1676_s19 + $0x28] sm:$0xff]  }
  0x38   : > { %v601_v50 = vsub.f32 %v1282_v41, %v1154_v37  ;;  %v1219_v51 = vunpack.c.h.bf16 %v1352_v28  ;;  %v664_v54 = vadd.f32 %v632_v45, %v504_v39  ;;  %v1283_v55 = vunpack.c.h.bf16 %v1367_v29  ;;  %v1370_v30 = vld [vmem:[%s1681_s7 + $0x28] sm:$0xff]   ;;  %v1341_v39 = vld [vmem:[%s1686_s10 + $0x30] sm:$0xff]  }
  0x39   : > { %v694_v43 = vsel %vm693_vm0, %v661_v34, 0.0  ;;  %v700_v48 = vsel %vm693_vm0, %v663_v38, 0.0  ;;  %v697_v53 = vsel %vm693_vm0, %v662_v44, 0.0  ;;  %v1158_v56 = vunpack.c.l.bf16 %v1338_v42  ;;  %v1356_v44 = vld [vmem:[%s1676_s19 + $0x30] sm:$0xff]  }
  0x3a   : > { %695 = vadd.xlane.f32.xlu0 %v694_v43  ;;  %701 = vadd.xlane.f32.xlu1 %v700_v48  ;;  %v505_v57 = vand.u32 2147483647, %v473_v49  ;;  %v633_v58 = vand.u32 2147483647, %v601_v50  ;;  %v474_v59 = vsub.f32 %v1219_v51, %v1155_v46  ;;  %v1222_v60 = vunpack.c.l.bf16 %v1353_v47  ;;  %v1371_v49 = vld [vmem:[%s1681_s7 + $0x30] sm:$0xff]  }
  0x3b   : > { %v703_v62 = vsel %vm693_vm0, %v664_v54, 0.0  ;;  %v602_v63 = vsub.f32 %v1283_v55, %v1155_v46  ;;  %v1286_v0 = vunpack.c.l.bf16 %v1368_v52  ;;  %v1159_v1 = vunpack.c.h.bf16 %v1338_v42 }
  0x3c   : > { %v665_v3 = vadd.f32 %v633_v58, %v505_v57  ;;  %v506_v4 = vand.u32 2147483647, %v474_v59  ;;  %v475_v5 = vsub.f32 %v1222_v60, %v1158_v56  ;;  %v1223_v6 = vunpack.c.h.bf16 %v1353_v47 }
  0x3d   : > { %v634_v8 = vand.u32 2147483647, %v602_v63  ;;  %v603_v9 = vsub.f32 %v1286_v0, %v1158_v56  ;;  %v1287_v10 = vunpack.c.h.bf16 %v1368_v52  ;;  %v1162_v11 = vunpack.c.l.bf16 %v1339_v61 }
  0x3e   : > { %698 = vadd.xlane.f32.xlu0 %v697_v53  ;;  %704 = vadd.xlane.f32.xlu1 %v703_v62  ;;  %v706_v12 = vsel %vm693_vm0, %v665_v3, 0.0  ;;  %v507_v13 = vand.u32 2147483647, %v475_v5  ;;  %v476_v14 = vsub.f32 %v1223_v6, %v1159_v1  ;;  %v1226_v15 = vunpack.c.l.bf16 %v1354_v2  ;;  %v1342_v62 = vld [vmem:[%s1686_s10 + $0x38] sm:$0xff]  }
  0x3f   : > { %v666_v16 = vadd.f32 %v634_v8, %v506_v4  ;;  %v635_v17 = vand.u32 2147483647, %v603_v9  ;;  %v604_v18 = vsub.f32 %v1287_v10, %v1159_v1  ;;  %v1290_v19 = vunpack.c.l.bf16 %v1369_v7  ;;  %v1357_v3 = vld [vmem:[%s1676_s19 + $0x38] sm:$0xff]  }
  0x40   : > { %v508_v21 = vand.u32 2147483647, %v476_v14  ;;  %v477_v22 = vsub.f32 %v1226_v15, %v1162_v11  ;;  %v1163_v23 = vunpack.c.h.bf16 %v1339_v61  ;;  %v1227_v24 = vunpack.c.h.bf16 %v1354_v2  ;;  %v1372_v8 = vld [vmem:[%s1681_s7 + $0x38] sm:$0xff]  }
  0x41   : > { %v709_v26 = vsel %vm693_vm0, %v666_v16, 0.0  ;;  %v667_v27 = vadd.f32 %v635_v17, %v507_v13  ;;  %v636_v28 = vand.u32 2147483647, %v604_v18  ;;  %v605_v29 = vsub.f32 %v1290_v19, %v1162_v11  ;;  %v1343_v17 = vld [vmem:[%s1686_s10 + $0x40] sm:$0xff]  }
  0x42   : > { %707 = vadd.xlane.f32.xlu0 %v706_v12  ;;  %710 = vadd.xlane.f32.xlu1 %v709_v26  ;;  %v509_v31 = vand.u32 2147483647, %v477_v22  ;;  %v478_v32 = vsub.f32 %v1227_v24, %v1163_v23  ;;  %v1291_v33 = vunpack.c.h.bf16 %v1369_v7  ;;  %v1166_v34 = vunpack.c.l.bf16 %v1340_v20  ;;  %v1358_v22 = vld [vmem:[%s1676_s19 + $0x40] sm:$0xff]  }
  0x43   : > { %v712_v35 = vsel %vm693_vm0, %v667_v27, 0.0  ;;  %v668_v36 = vadd.f32 %v636_v28, %v508_v21  ;;  %v637_v37 = vand.u32 2147483647, %v605_v29  ;;  %v1230_v38 = vunpack.c.l.bf16 %v1355_v25  ;;  %v1373_v27 = vld [vmem:[%s1681_s7 + $0x40] sm:$0xff]  }
  0x44   : > { %v510_v40 = vand.u32 2147483647, %v478_v32  ;;  %v606_v41 = vsub.f32 %v1291_v33, %v1163_v23  ;;  %v1294_v42 = vunpack.c.l.bf16 %v1370_v30  ;;  %v1167_v43 = vunpack.c.h.bf16 %v1340_v20 }
  0x45   : > { %v715_v45 = vsel %vm693_vm0, %v668_v36, 0.0  ;;  %v669_v46 = vadd.f32 %v637_v37, %v509_v31  ;;  %v479_v47 = vsub.f32 %v1230_v38, %v1166_v34  ;;  %v1231_v48 = vunpack.c.h.bf16 %v1355_v25 }
  0x46   : > { %713 = vadd.xlane.f32.xlu0 %v712_v35  ;;  %716 = vadd.xlane.f32.xlu1 %v715_v45  ;;  %v638_v50 = vand.u32 2147483647, %v606_v41  ;;  %v607_v51 = vsub.f32 %v1294_v42, %v1166_v34  ;;  %v1295_v52 = vunpack.c.h.bf16 %v1370_v30  ;;  %v1170_v53 = vunpack.c.l.bf16 %v1341_v39  ;;  %v1359_v45 = vld [vmem:[%s1676_s19 + $0x48] sm:$0xff]  }
  0x47   : > { %v718_v54 = vsel %vm693_vm0, %v669_v46, 0.0  ;;  %v511_v55 = vand.u32 2147483647, %v479_v47  ;;  %v480_v56 = vsub.f32 %v1231_v48, %v1167_v43  ;;  %v1234_v57 = vunpack.c.l.bf16 %v1356_v44 }
  0x48   : > { %v670_v58 = vadd.f32 %v638_v50, %v510_v40  ;;  %v639_v59 = vand.u32 2147483647, %v607_v51  ;;  %v608_v60 = vsub.f32 %v1295_v52, %v1167_v43  ;;  %v1298_v61 = vunpack.c.l.bf16 %v1371_v49  ;;  %v1344_v40 = vld [vmem:[%s1686_s10 + $0x48] sm:$0xff]  }
  0x49   : > { %v512_v63 = vand.u32 2147483647, %v480_v56  ;;  %v481_v0 = vsub.f32 %v1234_v57, %v1170_v53  ;;  %v1171_v1 = vunpack.c.h.bf16 %v1341_v39  ;;  %v1235_v2 = vunpack.c.h.bf16 %v1356_v44  ;;  %v1374_v50 = vld [vmem:[%s1681_s7 + $0x48] sm:$0xff]  }
  0x4a   : > { %719 = vadd.xlane.f32.xlu0 %v718_v54  ;;  %v721_v4 = vsel %vm693_vm0, %v670_v58, 0.0  ;;  %v671_v5 = vadd.f32 %v639_v59, %v511_v55  ;;  %v640_v6 = vand.u32 2147483647, %v608_v60  ;;  %v609_v7 = vsub.f32 %v1298_v61, %v1170_v53  ;;  %v1345_v59 = vld [vmem:[%s1686_s10 + $0x50] sm:$0xff]  }
  0x4b   : > { %722 = vadd.xlane.f32.xlu1 %v721_v4  ;;  %v513_v9 = vand.u32 2147483647, %v481_v0  ;;  %v482_v10 = vsub.f32 %v1235_v2, %v1171_v1  ;;  %v1299_v11 = vunpack.c.h.bf16 %v1371_v49  ;;  %v1174_v12 = vunpack.c.l.bf16 %v1342_v62  ;;  %v1360_v0 = vld [vmem:[%s1676_s19 + $0x50] sm:$0xff]  }
  0x4c   : > { %v724_v13 = vsel %vm693_vm0, %v671_v5, 0.0  ;;  %v672_v14 = vadd.f32 %v640_v6, %v512_v63  ;;  %v641_v15 = vand.u32 2147483647, %v609_v7  ;;  %v1238_v16 = vunpack.c.l.bf16 %v1357_v3  ;;  %v1375_v5 = vld [vmem:[%s1681_s7 + $0x50] sm:$0xff]  }
  0x4d   : > { %v514_v18 = vand.u32 2147483647, %v482_v10  ;;  %v610_v19 = vsub.f32 %v1299_v11, %v1171_v1  ;;  %v1302_v20 = vunpack.c.l.bf16 %v1372_v8  ;;  %v1175_v21 = vunpack.c.h.bf16 %v1342_v62 }
  0x4e   : > { %725 = vadd.xlane.f32.xlu0 %v724_v13  ;;  %v727_v23 = vsel %vm693_vm0, %v672_v14, 0.0  ;;  %v673_v24 = vadd.f32 %v641_v15, %v513_v9  ;;  %v483_v25 = vsub.f32 %v1238_v16, %v1174_v12  ;;  %v1239_v26 = vunpack.c.h.bf16 %v1357_v3 }
  0x4f   : > { %728 = vadd.xlane.f32.xlu1 %v727_v23  ;;  %v642_v28 = vand.u32 2147483647, %v610_v19  ;;  %v611_v29 = vsub.f32 %v1302_v20, %v1174_v12  ;;  %v1303_v30 = vunpack.c.h.bf16 %v1372_v8  ;;  %v1178_v31 = vunpack.c.l.bf16 %v1343_v17  ;;  %v1361_v23 = vld [vmem:[%s1676_s19 + $0x58] sm:$0xff]  }
  0x50   : > { %v730_v32 = vsel %vm693_vm0, %v673_v24, 0.0  ;;  %v515_v33 = vand.u32 2147483647, %v483_v25  ;;  %v484_v34 = vsub.f32 %v1239_v26, %v1175_v21  ;;  %v1242_v35 = vunpack.c.l.bf16 %v1358_v22 }
  0x51   : > { %v674_v36 = vadd.f32 %v642_v28, %v514_v18  ;;  %v643_v37 = vand.u32 2147483647, %v611_v29  ;;  %v612_v38 = vsub.f32 %v1303_v30, %v1175_v21  ;;  %v1306_v39 = vunpack.c.l.bf16 %v1373_v27  ;;  %v1346_v18 = vld [vmem:[%s1686_s10 + $0x58] sm:$0xff]  }
  0x52   : > { %731 = vadd.xlane.f32.xlu0 %v730_v32  ;;  %v516_v41 = vand.u32 2147483647, %v484_v34  ;;  %v485_v42 = vsub.f32 %v1242_v35, %v1178_v31  ;;  %v1179_v43 = vunpack.c.h.bf16 %v1343_v17  ;;  %v1243_v44 = vunpack.c.h.bf16 %v1358_v22  ;;  %v1376_v28 = vld [vmem:[%s1681_s7 + $0x58] sm:$0xff]  }
  0x53   : > { %v733_v46 = vsel %vm693_vm0, %v674_v36, 0.0  ;;  %v675_v47 = vadd.f32 %v643_v37, %v515_v33  ;;  %v644_v48 = vand.u32 2147483647, %v612_v38  ;;  %v613_v49 = vsub.f32 %v1306_v39, %v1178_v31  ;;  %v1347_v37 = vld [vmem:[%s1686_s10 + $0x60] sm:$0xff]  }
  0x54   : > { %734 = vadd.xlane.f32.xlu1 %v733_v46  ;;  %v517_v51 = vand.u32 2147483647, %v485_v42  ;;  %v486_v52 = vsub.f32 %v1243_v44, %v1179_v43  ;;  %v1307_v53 = vunpack.c.h.bf16 %v1373_v27  ;;  %v1182_v54 = vunpack.c.l.bf16 %v1344_v40  ;;  %v1362_v42 = vld [vmem:[%s1676_s19 + $0x60] sm:$0xff]  }
  0x55   : > { %v736_v55 = vsel %vm693_vm0, %v675_v47, 0.0  ;;  %v676_v56 = vadd.f32 %v644_v48, %v516_v41  ;;  %v645_v57 = vand.u32 2147483647, %v613_v49  ;;  %v1246_v58 = vunpack.c.l.bf16 %v1359_v45  ;;  %v1377_v47 = vld [vmem:[%s1681_s7 + $0x60] sm:$0xff]  }
  0x56   : > { %737 = vadd.xlane.f32.xlu0 %v736_v55  ;;  %v518_v60 = vand.u32 2147483647, %v486_v52  ;;  %v614_v61 = vsub.f32 %v1307_v53, %v1179_v43  ;;  %v1310_v62 = vunpack.c.l.bf16 %v1374_v50  ;;  %v1183_v63 = vunpack.c.h.bf16 %v1344_v40 }
  0x57   : > { %v739_v1 = vsel %vm693_vm0, %v676_v56, 0.0  ;;  %v677_v2 = vadd.f32 %v645_v57, %v517_v51  ;;  %v487_v3 = vsub.f32 %v1246_v58, %v1182_v54  ;;  %v1247_v4 = vunpack.c.h.bf16 %v1359_v45 }
  0x58   : > { %740 = vadd.xlane.f32.xlu1 %v739_v1  ;;  %v646_v6 = vand.u32 2147483647, %v614_v61  ;;  %v615_v7 = vsub.f32 %v1310_v62, %v1182_v54  ;;  %v1311_v8 = vunpack.c.h.bf16 %v1374_v50  ;;  %v1186_v9 = vunpack.c.l.bf16 %v1345_v59  ;;  %v1363_v1 = vld [vmem:[%s1676_s19 + $0x68] sm:$0xff]  }
  0x59   : > { %v742_v10 = vsel %vm693_vm0, %v677_v2, 0.0  ;;  %v519_v11 = vand.u32 2147483647, %v487_v3  ;;  %v488_v12 = vsub.f32 %v1247_v4, %v1183_v63  ;;  %v1250_v13 = vunpack.c.l.bf16 %v1360_v0 }
  0x5a   : > { %743 = vadd.xlane.f32.xlu0 %v742_v10  ;;  %v678_v14 = vadd.f32 %v646_v6, %v518_v60  ;;  %v647_v15 = vand.u32 2147483647, %v615_v7  ;;  %v616_v16 = vsub.f32 %v1311_v8, %v1183_v63  ;;  %v1314_v17 = vunpack.c.l.bf16 %v1375_v5  ;;  %v1348_v60 = vld [vmem:[%s1686_s10 + $0x68] sm:$0xff]  }
  0x5b   : > { %v520_v19 = vand.u32 2147483647, %v488_v12  ;;  %v489_v20 = vsub.f32 %v1250_v13, %v1186_v9  ;;  %v1187_v21 = vunpack.c.h.bf16 %v1345_v59  ;;  %v1251_v22 = vunpack.c.h.bf16 %v1360_v0  ;;  %v1378_v6 = vld [vmem:[%s1681_s7 + $0x68] sm:$0xff]  }
  0x5c   : > { %v745_v24 = vsel %vm693_vm0, %v678_v14, 0.0  ;;  %v679_v25 = vadd.f32 %v647_v15, %v519_v11  ;;  %v648_v26 = vand.u32 2147483647, %v616_v16  ;;  %v617_v27 = vsub.f32 %v1314_v17, %v1186_v9  ;;  %v1349_v15 = vld [vmem:[%s1686_s10 + $0x70] sm:$0xff]  }
  0x5d   : > { %746 = vadd.xlane.f32.xlu1 %v745_v24  ;;  %v521_v29 = vand.u32 2147483647, %v489_v20  ;;  %v490_v30 = vsub.f32 %v1251_v22, %v1187_v21  ;;  %v1315_v31 = vunpack.c.h.bf16 %v1375_v5  ;;  %v1190_v32 = vunpack.c.l.bf16 %v1346_v18  ;;  %v1364_v20 = vld [vmem:[%s1676_s19 + $0x70] sm:$0xff]  }
  0x5e   : > { %v748_v33 = vsel %vm693_vm0, %v679_v25, 0.0  ;;  %v680_v34 = vadd.f32 %v648_v26, %v520_v19  ;;  %v649_v35 = vand.u32 2147483647, %v617_v27  ;;  %v1254_v36 = vunpack.c.l.bf16 %v1361_v23  ;;  %v1379_v25 = vld [vmem:[%s1681_s7 + $0x70] sm:$0xff]  }
  0x5f   : > { %749 = vadd.xlane.f32.xlu0 %v748_v33  ;;  %v522_v38 = vand.u32 2147483647, %v490_v30  ;;  %v618_v39 = vsub.f32 %v1315_v31, %v1187_v21  ;;  %v1318_v40 = vunpack.c.l.bf16 %v1376_v28  ;;  %v1191_v41 = vunpack.c.h.bf16 %v1346_v18 }
  0x60   : > { %v751_v43 = vsel %vm693_vm0, %v680_v34, 0.0  ;;  %v681_v44 = vadd.f32 %v649_v35, %v521_v29  ;;  %v491_v45 = vsub.f32 %v1254_v36, %v1190_v32  ;;  %v1255_v46 = vunpack.c.h.bf16 %v1361_v23 }
  0x61   : > { %752 = vadd.xlane.f32.xlu1 %v751_v43  ;;  %v650_v48 = vand.u32 2147483647, %v618_v39  ;;  %v619_v49 = vsub.f32 %v1318_v40, %v1190_v32  ;;  %v1319_v50 = vunpack.c.h.bf16 %v1376_v28  ;;  %v1194_v51 = vunpack.c.l.bf16 %v1347_v37  ;;  %v1365_v43 = vld [vmem:[%s1676_s19 + $0x78] sm:$0xff]  }
  0x62   : > { %v754_v52 = vsel %vm693_vm0, %v681_v44, 0.0  ;;  %v523_v53 = vand.u32 2147483647, %v491_v45  ;;  %v492_v54 = vsub.f32 %v1255_v46, %v1191_v41  ;;  %v1258_v55 = vunpack.c.l.bf16 %v1362_v42 }
  0x63   : > { %755 = vadd.xlane.f32.xlu0 %v754_v52  ;;  %v682_v56 = vadd.f32 %v650_v48, %v522_v38  ;;  %v651_v57 = vand.u32 2147483647, %v619_v49  ;;  %v620_v58 = vsub.f32 %v1319_v50, %v1191_v41  ;;  %v1322_v59 = vunpack.c.l.bf16 %v1377_v47  ;;  %v1350_v38 = vld [vmem:[%s1686_s10 + $0x78] sm:$0xff]   ;;  %s1139_s10 = sshll.u32 %s1549_s22, 8  ;;  %s1141_s22 = sshll.u32 %s1553_s23, 7 }
  0x64   : > { %v524_v61 = vand.u32 2147483647, %v492_v54  ;;  %v493_v62 = vsub.f32 %v1258_v55, %v1194_v51  ;;  %v1195_v63 = vunpack.c.h.bf16 %v1347_v37  ;;  %v1259_v0 = vunpack.c.h.bf16 %v1362_v42  ;;  %v1380_v48 = vld [vmem:[%s1681_s7 + $0x78] sm:$0xff]   ;;  %s1914_s15 = scalar_lea.hbm %s1974_s4, %s1141_s22  ;;  %s1569_s23 = smov [#allocation4]  }
  0x65   : > { %v757_v2 = vsel %vm693_vm0, %v682_v56, 0.0  ;;  %v683_v3 = vadd.f32 %v651_v57, %v523_v53  ;;  %v652_v4 = vand.u32 2147483647, %v620_v58  ;;  %v621_v5 = vsub.f32 %v1322_v59, %v1194_v51  ;;  %s1473_s19 = sshll.u32 %s1569_s23, 4  ;;  %s1474_s19 = int_to_ptr.vmem [resolvable:$false] %s1473_s19 }
  0x66   : > { %758 = vadd.xlane.f32.xlu1 %v757_v2  ;;  %v525_v7 = vand.u32 2147483647, %v493_v62  ;;  %v494_v8 = vsub.f32 %v1259_v0, %v1195_v63  ;;  %v1323_v9 = vunpack.c.h.bf16 %v1377_v47  ;;  %v1198_v10 = vunpack.c.l.bf16 %v1348_v60  ;;  %s1475_s27 = scalar_lea.vmem %s1474_s19, 256  ;;  %p1476_p10 = scmp.lt.s32.totalorder %s1916_s11, %s1474_s19 }
  0x67   : > { %v760_v11 = vsel %vm693_vm0, %v683_v3, 0.0  ;;  %v684_v12 = vadd.f32 %v652_v4, %v524_v61  ;;  %v653_v13 = vand.u32 2147483647, %v621_v5  ;;  %v1262_v14 = vunpack.c.l.bf16 %v1363_v1  ;;  %p1477_p11 = scmp.lt.s32.totalorder %s1475_s27, %s1469_s18 }
  0x68   : > { %761 = vadd.xlane.f32.xlu0 %v760_v11  ;;  %v526_v16 = vand.u32 2147483647, %v494_v8  ;;  %v622_v17 = vsub.f32 %v1323_v9, %v1195_v63  ;;  %v1326_v18 = vunpack.c.l.bf16 %v1378_v6  ;;  %v1199_v19 = vunpack.c.h.bf16 %v1348_v60 }
  0x69   : > { %v763_v21 = vsel %vm693_vm0, %v684_v12, 0.0  ;;  %v685_v22 = vadd.f32 %v653_v13, %v525_v7  ;;  %v495_v23 = vsub.f32 %v1262_v14, %v1198_v10  ;;  %v1263_v24 = vunpack.c.h.bf16 %v1363_v1  ;;  %p1478_p12 = por %p1477_p11, %p1476_p10 }
  0x6a   : > { %764 = vadd.xlane.f32.xlu1 %v763_v21  ;;  %v654_v26 = vand.u32 2147483647, %v622_v17  ;;  %v623_v27 = vsub.f32 %v1326_v18, %v1198_v10  ;;  %v1327_v28 = vunpack.c.h.bf16 %v1378_v6  ;;  %v1202_v29 = vunpack.c.l.bf16 %v1349_v15 }
  0x6b   : > { %v766_v30 = vsel %vm693_vm0, %v685_v22, 0.0  ;;  %v527_v31 = vand.u32 2147483647, %v495_v23  ;;  %v496_v32 = vsub.f32 %v1263_v24, %v1199_v19  ;;  %v1266_v33 = vunpack.c.l.bf16 %v1364_v20  ;;  %p1479_p13 = pnand %p1478_p12, %p1472_p9 }
  0x6c   : > { %767 = vadd.xlane.f32.xlu0 %v766_v30  ;;  %v686_v34 = vadd.f32 %v654_v26, %v526_v16  ;;  %v655_v35 = vand.u32 2147483647, %v623_v27  ;;  %v624_v36 = vsub.f32 %v1327_v28, %v1199_v19  ;;  %v1330_v37 = vunpack.c.l.bf16 %v1379_v25 }
  0x6d   : > { %v528_v39 = vand.u32 2147483647, %v496_v32  ;;  %v497_v40 = vsub.f32 %v1266_v33, %v1202_v29  ;;  %v1203_v41 = vunpack.c.h.bf16 %v1349_v15  ;;  %v1267_v42 = vunpack.c.h.bf16 %v1364_v20 }
  0x6e   : > { %v769_v44 = vsel %vm693_vm0, %v686_v34, 0.0  ;;  %v687_v45 = vadd.f32 %v655_v35, %v527_v31  ;;  %v656_v46 = vand.u32 2147483647, %v624_v36  ;;  %v625_v47 = vsub.f32 %v1330_v37, %v1202_v29 }
  0x6f   : > { %770 = vadd.xlane.f32.xlu1 %v769_v44  ;;  %v529_v49 = vand.u32 2147483647, %v497_v40  ;;  %v498_v50 = vsub.f32 %v1267_v42, %v1203_v41  ;;  %v1331_v51 = vunpack.c.h.bf16 %v1379_v25  ;;  %v1206_v52 = vunpack.c.l.bf16 %v1350_v38 }
  0x70   : > { %v772_v53 = vsel %vm693_vm0, %v687_v45, 0.0  ;;  %v688_v54 = vadd.f32 %v656_v46, %v528_v39  ;;  %v657_v55 = vand.u32 2147483647, %v625_v47  ;;  %v1270_v56 = vunpack.c.l.bf16 %v1365_v43 }
  0x71   : > { %773 = vadd.xlane.f32.xlu0 %v772_v53  ;;  %v530_v57 = vand.u32 2147483647, %v498_v50  ;;  %v626_v58 = vsub.f32 %v1331_v51, %v1203_v41  ;;  %v1334_v59 = vunpack.c.l.bf16 %v1380_v48  ;;  %v1207_v60 = vunpack.c.h.bf16 %v1350_v38 }
  0x72   : > { %v775_v61 = vsel %vm693_vm0, %v688_v54, 0.0  ;;  %v689_v62 = vadd.f32 %v657_v55, %v529_v49  ;;  %v499_v63 = vsub.f32 %v1270_v56, %v1206_v52  ;;  %v1271_v0 = vunpack.c.h.bf16 %v1365_v43 }
  0x73   : > { %776 = vadd.xlane.f32.xlu1 %v775_v61  ;;  %v658_v1 = vand.u32 2147483647, %v626_v58  ;;  %v627_v2 = vsub.f32 %v1334_v59, %v1206_v52  ;;  %v1335_v3 = vunpack.c.h.bf16 %v1380_v48  ;;  %v791_v17 = vlaneseq }
  0x74   : > { %v778_v4 = vsel %vm693_vm0, %v689_v62, 0.0  ;;  %v531_v5 = vand.u32 2147483647, %v499_v63  ;;  %v500_v6 = vsub.f32 %v1271_v0, %v1207_v60  ;;  %v1776_v19 = vstv %s1139_s10 }
  0x75   : > { %779 = vadd.xlane.f32.xlu0 %v778_v4  ;;  %v690_v7 = vadd.f32 %v658_v1, %v530_v57  ;;  %v659_v8 = vand.u32 2147483647, %v627_v2  ;;  %v628_v9 = vsub.f32 %v1335_v3, %v1207_v60  ;;  %v1774_v18 = vshrl.u32 %v791_v17, 7 }
  0x76   : > { %v532_v10 = vand.u32 2147483647, %v500_v6  ;;  %v1783_v24 = vstv %s790_s30 }
  0x77   : > { %v781_v11 = vsel %vm693_vm0, %v690_v7, 0.0  ;;  %v691_v12 = vadd.f32 %v659_v8, %v531_v5  ;;  %v660_v13 = vand.u32 2147483647, %v628_v9  ;;  %v794_v20 = vadd.s32 16, %v1774_v18 }
  0x78   : > { %782 = vadd.xlane.f32.xlu1 %v781_v11  ;;  %v793_v21 = vadd.s32 8, %v1774_v18  ;;  %v795_v22 = vadd.s32 24, %v1774_v18  ;;  %v826_v23 = vadd.s32 %v1776_v19, %v1774_v18  ;;  %v796_v25 = vadd.s32 32, %v1774_v18 }
  0x79   : > { %v784_v14 = vsel %vm693_vm0, %v691_v12, 0.0  ;;  %v692_v15 = vadd.f32 %v660_v13, %v532_v10  ;;  %v828_v26 = vadd.s32 %v1776_v19, %v794_v20  ;;  %v797_v30 = vadd.s32 40, %v1774_v18 }
  0x7a   : > { %785 = vadd.xlane.f32.xlu0 %v784_v14  ;;  %v827_v27 = vadd.s32 %v1776_v19, %v793_v21  ;;  %v829_v28 = vadd.s32 %v1776_v19, %v795_v22  ;;  %vm859_vm1 = vcmp.lt.s32.totalorder %v826_v23, %v1783_v24  ;;  %v830_v32 = vadd.s32 %v1776_v19, %v796_v25 }
  0x7b   : > { %v787_v16 = vsel %vm693_vm0, %v692_v15, 0.0  ;;  %v798_v33 = vadd.s32 48, %v1774_v18  ;;  %vm861_vm2 = vcmp.lt.s32.totalorder %v828_v26, %v1783_v24  ;;  %v831_v36 = vadd.s32 %v1776_v19, %v797_v30 }
  0x7c   : > { %788 = vadd.xlane.f32.xlu1 %v787_v16  ;;  %vm860_vm3 = vcmp.lt.s32.totalorder %v827_v27, %v1783_v24  ;;  %vm862_vm5 = vcmp.lt.s32.totalorder %v829_v28, %v1783_v24  ;;  %v799_v37 = vadd.s32 56, %v1774_v18  ;;  %vm863_vm6 = vcmp.lt.s32.totalorder %v830_v32, %v1783_v24 }
  0x7d   : > { %v832_v41 = vadd.s32 %v1776_v19, %v798_v33  ;;  %v800_v45 = vadd.s32 64, %v1774_v18  ;;  %vm864_vm7 = vcmp.lt.s32.totalorder %v831_v36, %v1783_v24  ;;  %v801_v53 = vadd.s32 72, %v1774_v18 }
  0x7e   : > { %v833_v50 = vadd.s32 %v1776_v19, %v799_v37  ;;  %v802_v59 = vadd.s32 80, %v1774_v18  ;;  %v803_v1 = vadd.s32 88, %v1774_v18  ;;  %v804_v7 = vadd.s32 96, %v1774_v18 }
  0x7f   : > { %vm865_vm8 = vcmp.lt.s32.totalorder %v832_v41, %v1783_v24  ;;  %v834_v56 = vadd.s32 %v1776_v19, %v800_v45  ;;  %v835_v0 = vadd.s32 %v1776_v19, %v801_v53  ;;  %v805_v14 = vadd.s32 104, %v1774_v18 }
  0x80   : > { %vm866_vm9 = vcmp.lt.s32.totalorder %v833_v50, %v1783_v24  ;;  %v836_v6 = vadd.s32 %v1776_v19, %v802_v59  ;;  %v837_v12 = vadd.s32 %v1776_v19, %v803_v1  ;;  %v838_v17 = vadd.s32 %v1776_v19, %v804_v7 }
  0x81   : > { %vm867_vm10 = vcmp.lt.s32.totalorder %v834_v56, %v1783_v24  ;;  %vm868_vm11 = vcmp.lt.s32.totalorder %v835_v0, %v1783_v24  ;;  %v806_v21 = vadd.s32 112, %v1774_v18  ;;  %v839_v27 = vadd.s32 %v1776_v19, %v805_v14 }
  0x82   : > { %vm869_vm12 = vcmp.lt.s32.totalorder %v836_v6, %v1783_v24  ;;  %vm870_vm13 = vcmp.lt.s32.totalorder %v837_v12, %v1783_v24  ;;  %v807_v28 = vadd.s32 120, %v1774_v18  ;;  %vm871_vm14 = vcmp.lt.s32.totalorder %v838_v17, %v1783_v24 }
  0x83   : > { %v840_v33 = vadd.s32 %v1776_v19, %v806_v21  ;;  %vm872_vm15 = vcmp.lt.s32.totalorder %v839_v27, %v1783_v24  ;;  %v811_v53 = vadd.s32 152, %v1774_v18  ;;  %v812_v59 = vadd.s32 160, %v1774_v18 }
  0x84   : > { %v814_v7 = vadd.s32 176, %v1774_v18  ;;  %v816_v21 = vadd.s32 192, %v1774_v18 }
  0x85   : > { %vm873_vm0 = vcmp.lt.s32.totalorder %v840_v33, %v1783_v24  ;;  %v845_v0 = vadd.s32 %v1776_v19, %v811_v53  ;;  %v821_v53 = vadd.s32 232, %v1774_v18 }
  0xc7   : > { %v696_v29 = vpop.xlane.xlu0 %695  ;;  %v702_v31 = vpop.xlane.xlu1 %701 }
  0xc8   : > { %v891_v34 = vsel %vm859_vm1, %v696_v29, 0.0  ;;  %v893_v38 = vsel %vm861_vm2, %v702_v31, 0.0 }
  0xc9   : > { %v925_v42 = vsel %vm924_vm4, %v891_v34, 0.0  ;;  %v928_v47 = vsel %vm924_vm4, %v893_v38, 0.0  ;;  %v808_v34 = vadd.s32 128, %v1774_v18 }
  0xcb   : > { %v699_v35 = vpop.xlane.xlu0 %698  ;;  %v705_v40 = vpop.xlane.xlu1 %704 }
  0xcc   : > { %v892_v39 = vsel %vm860_vm3, %v699_v35, 0.0  ;;  %v894_v44 = vsel %vm862_vm5, %v705_v40, 0.0 }
  0xcd   : > { %v926_v43 = vsel %vm924_vm4, %v892_v39, 0.0  ;;  %v930_v48 = vsel %vm924_vm4, %v894_v44, 0.0  ;;  %v841_v39 = vadd.s32 %v1776_v19, %v807_v28  ;;  %v842_v44 = vadd.s32 %v1776_v19, %v808_v34 }
  0xce   : > { %v927_v46 = vadd.f32 %v926_v43, %v925_v42  ;;  %v809_v42 = vadd.s32 136, %v1774_v18  ;;  %v818_v34 = vadd.s32 208, %v1774_v18 }
  0xcf   : > { %v708_v49 = vpop.xlane.xlu0 %707  ;;  %v711_v55 = vpop.xlane.xlu1 %710  ;;  %vm874_vm1 = vcmp.lt.s32.totalorder %v841_v39, %v1783_v24  ;;  %vm875_vm2 = vcmp.lt.s32.totalorder %v842_v44, %v1783_v24 }
  0xd0   : > { %v929_v51 = vadd.f32 %v928_v47, %v927_v46  ;;  %v895_v52 = vsel %vm863_vm6, %v708_v49, 0.0  ;;  %v896_v58 = vsel %vm864_vm7, %v711_v55, 0.0  ;;  %v810_v47 = vadd.s32 144, %v1774_v18 }
  0xd1   : > { %v932_v54 = vsel %vm924_vm4, %v895_v52, 0.0  ;;  %v934_v60 = vsel %vm924_vm4, %v896_v58, 0.0  ;;  %v843_v52 = vadd.s32 %v1776_v19, %v809_v42  ;;  %vm878_vm6 = vcmp.lt.s32.totalorder %v845_v0, %v1783_v24 }
  0xd2   : > { %v931_v57 = vadd.f32 %v930_v48, %v929_v51  ;;  %v844_v58 = vadd.s32 %v1776_v19, %v810_v47  ;;  %v823_v0 = vadd.s32 248, %v1774_v18 }
  0xd3   : > { %v714_v61 = vpop.xlane.xlu0 %713  ;;  %v717_v3 = vpop.xlane.xlu1 %716  ;;  %vm876_vm3 = vcmp.lt.s32.totalorder %v843_v52, %v1783_v24 }
  0xd4   : > { %v933_v62 = vadd.f32 %v932_v54, %v931_v57  ;;  %v897_v63 = vsel %vm865_vm8, %v714_v61, 0.0  ;;  %v898_v5 = vsel %vm866_vm9, %v717_v3, 0.0  ;;  %vm877_vm5 = vcmp.lt.s32.totalorder %v844_v58, %v1783_v24 }
  0xd5   : > { %v936_v2 = vsel %vm924_vm4, %v897_v63, 0.0  ;;  %v938_v8 = vsel %vm924_vm4, %v898_v5, 0.0  ;;  %v846_v5 = vadd.s32 %v1776_v19, %v812_v59  ;;  %v822_v58 = vadd.s32 240, %v1774_v18 }
  0xd6   : > { %v935_v4 = vadd.f32 %v934_v60, %v933_v62 }
  0xd7   : > { %v720_v9 = vpop.xlane.xlu0 %719  ;;  %vm879_vm7 = vcmp.lt.s32.totalorder %v846_v5, %v1783_v24  ;;  %v856_v5 = vadd.s32 %v1776_v19, %v822_v58 }
  0xd8   : > { %v937_v10 = vadd.f32 %v936_v2, %v935_v4  ;;  %v899_v11 = vsel %vm867_vm10, %v720_v9, 0.0  ;;  %v723_v16 = vpop.xlane.xlu1 %722  ;;  %v813_v2 = vadd.s32 168, %v1774_v18 }
  0xd9   : > { %v940_v13 = vsel %vm924_vm4, %v899_v11, 0.0  ;;  %v900_v20 = vsel %vm868_vm11, %v723_v16, 0.0 }
  0xda   : > { %v939_v15 = vadd.f32 %v938_v8, %v937_v10  ;;  %v942_v23 = vsel %vm924_vm4, %v900_v20, 0.0  ;;  %v847_v12 = vadd.s32 %v1776_v19, %v813_v2  ;;  %v848_v20 = vadd.s32 %v1776_v19, %v814_v7 }
  0xdb   : > { %v726_v25 = vpop.xlane.xlu0 %725 }
  0xdc   : > { %v941_v22 = vadd.f32 %v940_v13, %v939_v15  ;;  %v901_v26 = vsel %vm869_vm12, %v726_v25, 0.0  ;;  %v729_v31 = vpop.xlane.xlu1 %728  ;;  %v815_v13 = vadd.s32 184, %v1774_v18  ;;  %vm880_vm8 = vcmp.lt.s32.totalorder %v847_v12, %v1783_v24 }
  0xdd   : > { %v944_v30 = vsel %vm924_vm4, %v901_v26, 0.0  ;;  %v902_v32 = vsel %vm870_vm13, %v729_v31, 0.0  ;;  %vm881_vm9 = vcmp.lt.s32.totalorder %v848_v20, %v1783_v24 }
  0xde   : > { %v943_v29 = vadd.f32 %v942_v23, %v941_v22  ;;  %v946_v36 = vsel %vm924_vm4, %v902_v32, 0.0  ;;  %v849_v27 = vadd.s32 %v1776_v19, %v815_v13  ;;  %v850_v32 = vadd.s32 %v1776_v19, %v816_v21 }
  0xdf   : > { %v732_v37 = vpop.xlane.xlu0 %731 }
  0xe0   : > { %v945_v35 = vadd.f32 %v944_v30, %v943_v29  ;;  %v903_v38 = vsel %vm871_vm14, %v732_v37, 0.0  ;;  %v817_v29 = vadd.s32 200, %v1774_v18  ;;  %vm882_vm10 = vcmp.lt.s32.totalorder %v849_v27, %v1783_v24 }
  0xe1   : > { %v948_v41 = vsel %vm924_vm4, %v903_v38, 0.0  ;;  %v735_v43 = vpop.xlane.xlu1 %734  ;;  %vm883_vm11 = vcmp.lt.s32.totalorder %v850_v32, %v1783_v24  ;;  %v923_v32 = vld [vmem:[%s1688_s29] sm:$0xff] }
  0xe2   : > { %v947_v40 = vadd.f32 %v946_v36, %v945_v35  ;;  %v904_v46 = vsel %vm872_vm15, %v735_v43, 0.0  ;;  %v851_v39 = vadd.s32 %v1776_v19, %v817_v29 }
  0xe3   : > { %v950_v48 = vsel %vm924_vm4, %v904_v46, 0.0  ;;  %v738_v49 = vpop.xlane.xlu0 %737  ;;  %v820_v46 = vadd.s32 224, %v1774_v18 }
  0xe4   : > { %v949_v45 = vadd.f32 %v948_v41, %v947_v40  ;;  %v905_v51 = vsel %vm873_vm0, %v738_v49, 0.0  ;;  %v819_v40 = vadd.s32 216, %v1774_v18  ;;  %vm884_vm12 = vcmp.lt.s32.totalorder %v851_v39, %v1783_v24 }
  0xe5   : > { %v952_v54 = vsel %vm924_vm4, %v905_v51, 0.0  ;;  %v741_v55 = vpop.xlane.xlu1 %740 }
  0xe6   : > { %v951_v50 = vadd.f32 %v950_v48, %v949_v45  ;;  %v906_v57 = vsel %vm874_vm1, %v741_v55, 0.0  ;;  %v852_v45 = vadd.s32 %v1776_v19, %v818_v34  ;;  %v853_v51 = vadd.s32 %v1776_v19, %v819_v40 }
  0xe7   : > { %v954_v60 = vsel %vm924_vm4, %v906_v57, 0.0  ;;  %v744_v61 = vpop.xlane.xlu0 %743  ;;  %vm889_vm1 = vcmp.lt.s32.totalorder %v856_v5, %v1783_v24 }
  0xe8   : > { %v953_v56 = vadd.f32 %v952_v54, %v951_v50  ;;  %v907_v63 = vsel %vm875_vm2, %v744_v61, 0.0  ;;  %vm885_vm13 = vcmp.lt.s32.totalorder %v852_v45, %v1783_v24  ;;  %vm886_vm14 = vcmp.lt.s32.totalorder %v853_v51, %v1783_v24 }
  0xe9   : > { %v956_v1 = vsel %vm924_vm4, %v907_v63, 0.0  ;;  %v855_v63 = vadd.s32 %v1776_v19, %v821_v53 }
  0xea   : > { %v955_v62 = vadd.f32 %v954_v60, %v953_v56  ;;  %v747_v4 = vpop.xlane.xlu1 %746  ;;  %v854_v56 = vadd.s32 %v1776_v19, %v820_v46 }
  0xeb   : > { %v908_v6 = vsel %vm876_vm3, %v747_v4, 0.0  ;;  %vm888_vm0 = vcmp.lt.s32.totalorder %v855_v63, %v1783_v24 }
  0xec   : > { %v957_v3 = vadd.f32 %v956_v1, %v955_v62  ;;  %v958_v8 = vsel %vm924_vm4, %v908_v6, 0.0  ;;  %v750_v9 = vpop.xlane.xlu0 %749  ;;  %vm887_vm15 = vcmp.lt.s32.totalorder %v854_v56, %v1783_v24 }
  0xed   : > { %v909_v11 = vsel %vm877_vm5, %v750_v9, 0.0 }
  0xee   : > { %v959_v10 = vadd.f32 %v958_v8, %v957_v3  ;;  %v960_v14 = vsel %vm924_vm4, %v909_v11, 0.0  ;;  %v753_v15 = vpop.xlane.xlu1 %752 }
  0xef   : > { %v910_v17 = vsel %vm878_vm6, %v753_v15, 0.0 }
  0xf0   : > { %v961_v16 = vadd.f32 %v960_v14, %v959_v10  ;;  %v962_v22 = vsel %vm924_vm4, %v910_v17, 0.0  ;;  %v756_v23 = vpop.xlane.xlu0 %755  ;;  %v857_v10 = vadd.s32 %v1776_v19, %v823_v0 }
  0xf1   : > { %v911_v26 = vsel %vm879_vm7, %v756_v23, 0.0 }
  0xf2   : > { %v963_v25 = vadd.f32 %v962_v22, %v961_v16  ;;  %v964_v28 = vsel %vm924_vm4, %v911_v26, 0.0  ;;  %vm890_vm2 = vcmp.lt.s32.totalorder %v857_v10, %v1783_v24 }
  0xf3   : > { %v759_v31 = vpop.xlane.xlu1 %758 }
  0xf4   : > { %v965_v30 = vadd.f32 %v964_v28, %v963_v25  ;;  %v912_v33 = vsel %vm880_vm8, %v759_v31, 0.0 }
  0xf5   : > { %v966_v35 = vsel %vm924_vm4, %v912_v33, 0.0  ;;  %v762_v36 = vpop.xlane.xlu0 %761 }
  0xf6   : > { %v967_v37 = vadd.f32 %v966_v35, %v965_v30  ;;  %v913_v38 = vsel %vm881_vm9, %v762_v36, 0.0 }
  0xf7   : > { %v968_v41 = vsel %vm924_vm4, %v913_v38, 0.0  ;;  %v765_v42 = vpop.xlane.xlu1 %764 }
  0xf8   : > { %v969_v43 = vadd.f32 %v968_v41, %v967_v37  ;;  %v914_v44 = vsel %vm882_vm10, %v765_v42, 0.0 }
  0xf9   : > { %v970_v47 = vsel %vm924_vm4, %v914_v44, 0.0  ;;  %v768_v48 = vpop.xlane.xlu0 %767 }
  0xfa   : > { %v971_v49 = vadd.f32 %v970_v47, %v969_v43  ;;  %v915_v50 = vsel %vm883_vm11, %v768_v48, 0.0 }
  0xfb   : > { %v972_v52 = vsel %vm924_vm4, %v915_v50, 0.0 }
  0xfc   : > { %v973_v54 = vadd.f32 %v972_v52, %v971_v49  ;;  %v771_v55 = vpop.xlane.xlu1 %770 }
  0xfd   : > { %v916_v57 = vsel %vm884_vm12, %v771_v55, 0.0 }
  0xfe   : > { %v974_v59 = vsel %vm924_vm4, %v916_v57, 0.0  ;;  %v774_v60 = vpop.xlane.xlu0 %773 }
  0xff   : > { %v975_v61 = vadd.f32 %v974_v59, %v973_v54  ;;  %v917_v62 = vsel %vm885_vm13, %v774_v60, 0.0 }
 0x100   : > { %v976_v1 = vsel %vm924_vm4, %v917_v62, 0.0  ;;  %v777_v2 = vpop.xlane.xlu1 %776 }
 0x101   : > { %v977_v3 = vadd.f32 %v976_v1, %v975_v61  ;;  %v918_v4 = vsel %vm886_vm14, %v777_v2, 0.0 }
 0x102   : > { %v978_v6 = vsel %vm924_vm4, %v918_v4, 0.0  ;;  %v780_v7 = vpop.xlane.xlu0 %779 }
 0x103   : > { %v979_v8 = vadd.f32 %v978_v6, %v977_v3  ;;  %v919_v9 = vsel %vm887_vm15, %v780_v7, 0.0 }
 0x104   : > { %v980_v18 = vsel %vm924_vm4, %v919_v9, 0.0 }
 0x105   : > { %v981_v11 = vadd.f32 %v980_v18, %v979_v8  ;;  %v783_v12 = vpop.xlane.xlu1 %782 }
 0x106   : > { %v920_v13 = vsel %vm888_vm0, %v783_v12, 0.0 }
 0x107   : > { %v982_v14 = vsel %vm924_vm4, %v920_v13, 0.0  ;;  %v786_v15 = vpop.xlane.xlu0 %785 }
 0x108   : > { %v983_v16 = vadd.f32 %v982_v14, %v981_v11  ;;  %v921_v17 = vsel %vm889_vm1, %v786_v15, 0.0 }
 0x109   : > { %v984_v20 = vsel %vm924_vm4, %v921_v17, 0.0  ;;  %v789_v21 = vpop.xlane.xlu1 %788 }
 0x10a   : > { %v985_v19 = vadd.f32 %v984_v20, %v983_v16  ;;  %v922_v22 = vsel %vm890_vm2, %v789_v21, 0.0 }
 0x10b   : > { %v986_v23 = vsel %vm924_vm4, %v922_v22, 0.0 }
 0x10c   : > { %v987_v25 = vadd.f32 %v986_v23, %v985_v19 }
 0x10e   : > { %988 = vadd.xlane.f32.xlu0 %v987_v25 }
 0x19b   : > { %v989_v26 = vpop.xlane.xlu0 %988 }
 0x19c   : > { %v990_v27 = vrot.slane %v989_v26, 4 }
 0x19e   : > { %v991_v28 = vadd.f32 %v990_v27, %v989_v26 }
 0x1a0   : > { %v992_v24 = vrot.slane %v991_v28, 2 }
 0x1a2   : > { %v993_v29 = vadd.f32 %v992_v24, %v991_v28 }
 0x1a4   : > { %v994_v30 = vrot.slane %v993_v29, 1 }
 0x1a6   : > { %v995_v31 = vadd.f32 %v994_v30, %v993_v29 }
 0x1a8   : > { %1382 = vpush %v995_v31 }
 0x1d9   : > { %s1383_s12 = spop %1382 }
 0x1da   : > { %v997_v33 = vstv %s1383_s12 }
 0x1db   : > { %v998_v34 = vadd.f32 %v997_v33, %v923_v32 }
 0x1dd   : > { %999 = vst [vmem:[%s1688_s29] sm:$0xff] %v998_v34 }
 0x1de   : > { %1482 = shalt.err (!%p1479_p13)
}
 0x1df   : > { %s1483_s29 = scalar_lea.hbm %s1914_s15, 128  ;;  %s1487_s8 = scalar_lea.hbm %s1974_s4, 256 }
 0x1e0   : > { %p1484_p1 = scmp.ne.s32.totalorder %s1914_s15, %s1483_s29  ;;  %p1488_p4 = scmp.lt.u32.totalorder %s1914_s15, %s1974_s4 }
 0x1e1   : > { %p1489_p5 = scmp.lt.u32.totalorder %s1487_s8, %s1483_s29  ;;  %p1491_p7 = scmp.lt.u32.totalorder %s1483_s29, %s1914_s15 }
 0x1e2   : > { %p1485_p2 = pnand %p1484_p1, %p1647_p8 }
 0x1e3   : > { %p1490_p6 = por %p1489_p5, %p1488_p4 }
 0x1e4   : > { %p1486_p3 = pneg %p1485_p2 }
 0x1e5   : > { %p1492_p9 = por %p1491_p7, %p1490_p6 }
 0x1e7   : > { %p1493_p10 = pnand %p1492_p9, %p1486_p3 }
 0x1e9   : > { %1496 = shalt.err (!%p1493_p10)
}
 0x1ea   : > { %1384 = dma.vmem_to_hbm [thread:$0]  (%p1647_p8), %s1916_s11, 128, %s1914_s15, %s1001_s17  }
 0x1eb PF: > { %p1390_p11 = scmp.ge.s32.totalorder %s1565_s26, 2  ;;  %s1026_s22 = sand.u32 1, %s1537_s20  }
 0x1ec   : > { %s1027_s12 = scalar_lea.sflag [#allocation5], %s1026_s22 }
 0x1ed   : > { %p1387_p12 = pnand %p1390_p11, %p1657_p0 }
 0x1ef   : > { %1532 = dma.done.wait (!%p1387_p12), %s1027_s12, 128  }
 0x1f0   : > { %1534 = vsyncadd (!%p1387_p12), %s1027_s12, 4294967168  ;;  %s23_s26 = sadd.s32 1, %s1565_s26   ;;  %s1982_s5 = sld [smem:[#allocation8_spill]] }
 0x1f1   : > { %p20_p13 = scmp.ge.s32.totalorder %s23_s26, 10   ;;  %s1983_s11 = sld [smem:[#allocation9_spill]] }
 0x1f2   : > { %s1984_s20 = smov %s1541_s21  ;;  %s1985_s21 = smov %s1545_s0 }
 0x1f3   : > { %s1986_s0 = smov %s1665_s9  ;;  %s1987_s22 = smov %s1557_s24 }
 0x1f4   : > { %s1988_s23 = smov %s1561_s25  ;;  %22 = sbr.rel (!%p20_p13) target bundleno = 20 (0x14), region = 77 }
 0x1f6   : > { %s1989_s24 = smov %s1982_s5 }
 0x1f7   : > { %s1990_s25 = smov %s1983_s11 }
 0x1fb   :  { %1032 = vsyncpa [#allocation5], 1 }
 0x1fc   :  { %1034 = vsyncpa [#allocation5 + $0x1], 1 }

</bundles_post_ra>
